<compile_context>
chip_gen: v5e
topology: v5e:2x2
jax: 0.10.0
libtpu: 0.0.40
codegen_flags: <defaults>
</compile_context>

<pallas_src>
import jax
import jax.numpy as jnp
from jax.experimental import pallas as pl
from jax.experimental.pallas import tpu as pltpu


def _pick_row_tile(r0, w, elem_bytes, target_bytes=2 * 1024 * 1024):
    """Largest row tile that (a) divides r0, (b) is a multiple of 128 so every
    pooled output block keeps a sublane-friendly row count, and (c) keeps the
    input block under ~target_bytes. Falls back to a single whole-rows tile
    (block == full array, which always satisfies the tiling constraints)."""
    budget_rows = max(128, target_bytes // max(1, w * elem_bytes))
    best = None
    cand = 128
    while cand <= min(budget_rows, r0 // 2):
        if r0 % cand == 0:
            best = cand
        cand += 128
    return best if best is not None else r0


def _pool_chain_kernel(x_ref, se_ref, so_ref, o1_ref, o2_ref, o3_ref, o4_ref):
    """Four fused 2x2/2 max-pool stages on a (rows, W) tile.

    Rows = flattened N*C*H (pairs never cross channel boundaries because H is a
    multiple of 16 and the row tile is a multiple of 16). W sits on lanes.
    """

    def pool_stage(src_ref, dst_ref):
        r, wc = src_ref.shape
        rh, wh = r // 2, wc // 2

        # H-direction pair max: strided sublane ref loads (rows 0,2,.. / 1,3,..).
        m = jnp.maximum(src_ref[pl.ds(0, rh, stride=2), :],
                        src_ref[pl.ds(1, rh, stride=2), :])        # (rh, wc)

        # W-direction pair max + lane compaction via exact 0/1 selection matmuls
        # on the idle MXU: se picks even lanes, so picks odd lanes.
        se = se_ref[:wc, :wh]                                      # (wc, wh)
        so = so_ref[:wc, :wh]
        a = jnp.dot(m, se, preferred_element_type=jnp.float32)     # m[:, 2j]
        b = jnp.dot(m, so, preferred_element_type=jnp.float32)     # m[:, 2j+1]
        dst_ref[...] = jnp.maximum(a, b).astype(dst_ref.dtype)

    pool_stage(x_ref, o1_ref)
    pool_stage(o1_ref, o2_ref)
    pool_stage(o2_ref, o3_ref)
    pool_stage(o3_ref, o4_ref)


def feature_extractor_forward(x_nchw):
    """Pallas equivalent of the feature-extractor forward.

    x_nchw: (N, C, H, W) float array (PyTorch NCHW convention).
    Returns: list of 4 NCHW arrays, the outputs after each selected pool layer.
    """
    n, c, h, w = x_nchw.shape
    assert h % 16 == 0 and w % 16 == 0, "spatial dims must survive 4 halvings"
    dtype = x_nchw.dtype

    r0 = n * c * h
    x2d = x_nchw.reshape(r0, w)            # free reshape: no data movement

    tr = _pick_row_tile(r0, w, x_nchw.dtype.itemsize)
    assert r0 % tr == 0
    grid = (r0 // tr,)

    # Exact 0/1 lane-selection matrices; later stages use the top-left corner.
    wh = w // 2
    ii = jnp.arange(w, dtype=jnp.int32)[:, None]
    jj = jnp.arange(wh, dtype=jnp.int32)[None, :]
    s_even = (ii == 2 * jj).astype(dtype)
    s_odd = (ii == 2 * jj + 1).astype(dtype)

    out_shape = tuple(
        jax.ShapeDtypeStruct((r0 >> (k + 1), w >> (k + 1)), dtype)
        for k in range(4))
    in_specs = [
        pl.BlockSpec((tr, w), lambda i: (i, 0)),
        pl.BlockSpec((w, wh), lambda i: (0, 0)),   # constant block: fetched once
        pl.BlockSpec((w, wh), lambda i: (0, 0)),
    ]
    out_specs = tuple(
        pl.BlockSpec((tr >> (k + 1), w >> (k + 1)), lambda i: (i, 0))
        for k in range(4))

    outs = pl.pallas_call(
        _pool_chain_kernel,
        out_shape=out_shape,
        grid=grid,
        in_specs=in_specs,
        out_specs=out_specs,
        compiler_params=pltpu.CompilerParams(
            dimension_semantics=("parallel",),
            vmem_limit_bytes=32 * 1024 * 1024),
    )(x2d, s_even, s_odd)

    # Free reshapes back to NCHW (rows are (n, c, h') in row-major order).
    return [outs[k].reshape(n, c, h >> (k + 1), w >> (k + 1)) for k in range(4)]


def _pool_ref_nchw(x):
    """Pure-JAX reference: MaxPool2d(kernel_size=2, stride=2) on NCHW."""
    return jax.lax.reduce_window(
        x, -jnp.inf, jax.lax.max,
        window_dimensions=(1, 1, 2, 2),
        window_strides=(1, 1, 2, 2),
        padding="VALID",
    )


if __name__ == "__main__":
    key = jax.random.PRNGKey(0)
    # Small deterministic input: batch=2, channels=4, spatial 16 so four 2x
    # pools reach 1x1.
    x = jax.random.normal(key, (2, 4, 16, 16), dtype=jnp.float32)

    results = feature_extractor_forward(x)
    results = jax.block_until_ready(results)

    # Correctness check vs. pure-JAX reference of the as-written forward.
    ref = []
    r = x
    for _ in range(4):
        r = _pool_ref_nchw(r)
        ref.append(r)
    for got, want in zip(results, ref):
        assert got.shape == want.shape, (got.shape, want.shape)
        assert got.dtype == want.dtype
        assert jnp.allclose(got, want, atol=1e-5, rtol=1e-5), \
            "Pallas maxpool chain mismatch"

    print("KERNEL_OK")
</pallas_src>

<mosaic_0001>
module attributes {stable_mosaic.version = 11 : i64} {
  func.func @_pool_chain_kernel(%arg0: i32, %arg1: memref<128x16xf32, #tpu.memory_space<vmem>>, %arg2: memref<16x8xf32, #tpu.memory_space<vmem>>, %arg3: memref<16x8xf32, #tpu.memory_space<vmem>>, %arg4: memref<64x8xf32, #tpu.memory_space<vmem>>, %arg5: memref<32x4xf32, #tpu.memory_space<vmem>>, %arg6: memref<16x2xf32, #tpu.memory_space<vmem>>, %arg7: memref<8x1xf32, #tpu.memory_space<vmem>>) attributes {dimension_semantics = [#tpu.dimension_semantics<parallel>], iteration_bounds = array<i64: 1>, scalar_prefetch = 0 : i64, scratch_operands = 0 : i64, tpu.core_type = #tpu.core_type<tc>, window_params = [{transform_indices = @transform_0, window_bounds = array<i64: 128, 16>}, {pipeline_mode = #tpu.pipeline_mode<synchronous>, transform_indices = @transform_1, window_bounds = array<i64: 16, 8>}, {pipeline_mode = #tpu.pipeline_mode<synchronous>, transform_indices = @transform_2, window_bounds = array<i64: 16, 8>}, {transform_indices = @transform_3, window_bounds = array<i64: 64, 8>}, {transform_indices = @transform_4, window_bounds = array<i64: 32, 4>}, {transform_indices = @transform_5, window_bounds = array<i64: 16, 2>}, {transform_indices = @transform_6, window_bounds = array<i64: 8, 1>}]} {
    %c0 = arith.constant 0 : index
    %c0_0 = arith.constant 0 : index
    %0 = tpu.strided_load %arg1[%c0, %c0_0] {strides = array<i32: 2, 1>} : memref<128x16xf32, #tpu.memory_space<vmem>>, vector<64x16xf32>
    %c1 = arith.constant 1 : index
    %c0_1 = arith.constant 0 : index
    %1 = tpu.strided_load %arg1[%c1, %c0_1] {strides = array<i32: 2, 1>} : memref<128x16xf32, #tpu.memory_space<vmem>>, vector<64x16xf32>
    %2 = arith.maximumf %0, %1 : vector<64x16xf32>
    %c0_2 = arith.constant 0 : index
    %c0_3 = arith.constant 0 : index
    %3 = vector.load %arg2[%c0_2, %c0_3] : memref<16x8xf32, #tpu.memory_space<vmem>>, vector<16x8xf32>
    %c0_4 = arith.constant 0 : index
    %c0_5 = arith.constant 0 : index
    %4 = vector.load %arg3[%c0_4, %c0_5] : memref<16x8xf32, #tpu.memory_space<vmem>>, vector<16x8xf32>
    %cst = arith.constant dense<0.000000e+00> : vector<64x8xf32>
    %5 = tpu.matmul %2, %3, %cst {dimension_numbers = #tpu.dot_dimension_numbers<[1], [0], [0], [1], [0, 0, 1, 1], [], []>} : vector<64x16xf32>, vector<16x8xf32>, vector<64x8xf32> -> vector<64x8xf32>
    %cst_6 = arith.constant dense<0.000000e+00> : vector<64x8xf32>
    %6 = tpu.matmul %2, %4, %cst_6 {dimension_numbers = #tpu.dot_dimension_numbers<[1], [0], [0], [1], [0, 0, 1, 1], [], []>} : vector<64x16xf32>, vector<16x8xf32>, vector<64x8xf32> -> vector<64x8xf32>
    %7 = arith.maximumf %5, %6 : vector<64x8xf32>
    %c0_7 = arith.constant 0 : index
    %c0_8 = arith.constant 0 : index
    %8 = vector.load %arg4[%c0_7, %c0_8] : memref<64x8xf32, #tpu.memory_space<vmem>>, vector<64x8xf32>
    tpu.vector_store %arg4[%c0_7, %c0_8], %7 {strides = array<i32>} : memref<64x8xf32, #tpu.memory_space<vmem>>, vector<64x8xf32>,
    %c0_9 = arith.constant 0 : index
    %c0_10 = arith.constant 0 : index
    %9 = tpu.strided_load %arg4[%c0_9, %c0_10] {strides = array<i32: 2, 1>} : memref<64x8xf32, #tpu.memory_space<vmem>>, vector<32x8xf32>
    %c1_11 = arith.constant 1 : index
    %c0_12 = arith.constant 0 : index
    %10 = tpu.strided_load %arg4[%c1_11, %c0_12] {strides = array<i32: 2, 1>} : memref<64x8xf32, #tpu.memory_space<vmem>>, vector<32x8xf32>
    %11 = arith.maximumf %9, %10 : vector<32x8xf32>
    %c0_13 = arith.constant 0 : index
    %c0_14 = arith.constant 0 : index
    %12 = vector.load %arg2[%c0_13, %c0_14] : memref<16x8xf32, #tpu.memory_space<vmem>>, vector<8x4xf32>
    %c0_15 = arith.constant 0 : index
    %c0_16 = arith.constant 0 : index
    %13 = vector.load %arg3[%c0_15, %c0_16] : memref<16x8xf32, #tpu.memory_space<vmem>>, vector<8x4xf32>
    %cst_17 = arith.constant dense<0.000000e+00> : vector<32x4xf32>
    %14 = tpu.matmul %11, %12, %cst_17 {dimension_numbers = #tpu.dot_dimension_numbers<[1], [0], [0], [1], [0, 0, 1, 1], [], []>} : vector<32x8xf32>, vector<8x4xf32>, vector<32x4xf32> -> vector<32x4xf32>
    %cst_18 = arith.constant dense<0.000000e+00> : vector<32x4xf32>
    %15 = tpu.matmul %11, %13, %cst_18 {dimension_numbers = #tpu.dot_dimension_numbers<[1], [0], [0], [1], [0, 0, 1, 1], [], []>} : vector<32x8xf32>, vector<8x4xf32>, vector<32x4xf32> -> vector<32x4xf32>
    %16 = arith.maximumf %14, %15 : vector<32x4xf32>
    %c0_19 = arith.constant 0 : index
    %c0_20 = arith.constant 0 : index
    %17 = vector.load %arg5[%c0_19, %c0_20] : memref<32x4xf32, #tpu.memory_space<vmem>>, vector<32x4xf32>
    tpu.vector_store %arg5[%c0_19, %c0_20], %16 {strides = array<i32>} : memref<32x4xf32, #tpu.memory_space<vmem>>, vector<32x4xf32>,
    %c0_21 = arith.constant 0 : index
    %c0_22 = arith.constant 0 : index
    %18 = tpu.strided_load %arg5[%c0_21, %c0_22] {strides = array<i32: 2, 1>} : memref<32x4xf32, #tpu.memory_space<vmem>>, vector<16x4xf32>
    %c1_23 = arith.constant 1 : index
    %c0_24 = arith.constant 0 : index
    %19 = tpu.strided_load %arg5[%c1_23, %c0_24] {strides = array<i32: 2, 1>} : memref<32x4xf32, #tpu.memory_space<vmem>>, vector<16x4xf32>
    %20 = arith.maximumf %18, %19 : vector<16x4xf32>
    %c0_25 = arith.constant 0 : index
    %c0_26 = arith.constant 0 : index
    %21 = vector.load %arg2[%c0_25, %c0_26] : memref<16x8xf32, #tpu.memory_space<vmem>>, vector<4x2xf32>
    %c0_27 = arith.constant 0 : index
    %c0_28 = arith.constant 0 : index
    %22 = vector.load %arg3[%c0_27, %c0_28] : memref<16x8xf32, #tpu.memory_space<vmem>>, vector<4x2xf32>
    %cst_29 = arith.constant dense<0.000000e+00> : vector<16x2xf32>
    %23 = tpu.matmul %20, %21, %cst_29 {dimension_numbers = #tpu.dot_dimension_numbers<[1], [0], [0], [1], [0, 0, 1, 1], [], []>} : vector<16x4xf32>, vector<4x2xf32>, vector<16x2xf32> -> vector<16x2xf32>
    %cst_30 = arith.constant dense<0.000000e+00> : vector<16x2xf32>
    %24 = tpu.matmul %20, %22, %cst_30 {dimension_numbers = #tpu.dot_dimension_numbers<[1], [0], [0], [1], [0, 0, 1, 1], [], []>} : vector<16x4xf32>, vector<4x2xf32>, vector<16x2xf32> -> vector<16x2xf32>
    %25 = arith.maximumf %23, %24 : vector<16x2xf32>
    %c0_31 = arith.constant 0 : index
    %c0_32 = arith.constant 0 : index
    %26 = vector.load %arg6[%c0_31, %c0_32] : memref<16x2xf32, #tpu.memory_space<vmem>>, vector<16x2xf32>
    tpu.vector_store %arg6[%c0_31, %c0_32], %25 {strides = array<i32>} : memref<16x2xf32, #tpu.memory_space<vmem>>, vector<16x2xf32>,
    %c0_33 = arith.constant 0 : index
    %c0_34 = arith.constant 0 : index
    %27 = tpu.strided_load %arg6[%c0_33, %c0_34] {strides = array<i32: 2, 1>} : memref<16x2xf32, #tpu.memory_space<vmem>>, vector<8x2xf32>
    %c1_35 = arith.constant 1 : index
    %c0_36 = arith.constant 0 : index
    %28 = tpu.strided_load %arg6[%c1_35, %c0_36] {strides = array<i32: 2, 1>} : memref<16x2xf32, #tpu.memory_space<vmem>>, vector<8x2xf32>
    %29 = arith.maximumf %27, %28 : vector<8x2xf32>
    %c0_37 = arith.constant 0 : index
    %c0_38 = arith.constant 0 : index
    %30 = vector.load %arg2[%c0_37, %c0_38] : memref<16x8xf32, #tpu.memory_space<vmem>>, vector<2x1xf32>
    %c0_39 = arith.constant 0 : index
    %c0_40 = arith.constant 0 : index
    %31 = vector.load %arg3[%c0_39, %c0_40] : memref<16x8xf32, #tpu.memory_space<vmem>>, vector<2x1xf32>
    %cst_41 = arith.constant dense<0.000000e+00> : vector<8x1xf32>
    %32 = tpu.matmul %29, %30, %cst_41 {dimension_numbers = #tpu.dot_dimension_numbers<[1], [0], [0], [1], [0, 0, 1, 1], [], []>} : vector<8x2xf32>, vector<2x1xf32>, vector<8x1xf32> -> vector<8x1xf32>
    %cst_42 = arith.constant dense<0.000000e+00> : vector<8x1xf32>
    %33 = tpu.matmul %29, %31, %cst_42 {dimension_numbers = #tpu.dot_dimension_numbers<[1], [0], [0], [1], [0, 0, 1, 1], [], []>} : vector<8x2xf32>, vector<2x1xf32>, vector<8x1xf32> -> vector<8x1xf32>
    %34 = arith.maximumf %32, %33 : vector<8x1xf32>
    %c0_43 = arith.constant 0 : index
    %c0_44 = arith.constant 0 : index
    %35 = vector.load %arg7[%c0_43, %c0_44] : memref<8x1xf32, #tpu.memory_space<vmem>>, vector<8x1xf32>
    tpu.vector_store %arg7[%c0_43, %c0_44], %34 {strides = array<i32>} : memref<8x1xf32, #tpu.memory_space<vmem>>, vector<8x1xf32>,
    return
  }
  func.func @transform_0(%arg0: i32) -> (i32, i32) {
    %c0_i32 = arith.constant 0 : i32
    %c0_i32_0 = arith.constant 0 : i32
    return %arg0, %c0_i32 : i32, i32
  }
  func.func @transform_1(%arg0: i32) -> (i32, i32) {
    %c0_i32 = arith.constant 0 : i32
    %c0_i32_0 = arith.constant 0 : i32
    %c0_i32_1 = arith.constant 0 : i32
    return %c0_i32, %c0_i32_0 : i32, i32
  }
  func.func @transform_2(%arg0: i32) -> (i32, i32) {
    %c0_i32 = arith.constant 0 : i32
    %c0_i32_0 = arith.constant 0 : i32
    %c0_i32_1 = arith.constant 0 : i32
    return %c0_i32, %c0_i32_0 : i32, i32
  }
  func.func @transform_3(%arg0: i32) -> (i32, i32) {
    %c0_i32 = arith.constant 0 : i32
    %c0_i32_0 = arith.constant 0 : i32
    return %arg0, %c0_i32 : i32, i32
  }
  func.func @transform_4(%arg0: i32) -> (i32, i32) {
    %c0_i32 = arith.constant 0 : i32
    %c0_i32_0 = arith.constant 0 : i32
    return %arg0, %c0_i32 : i32, i32
  }
  func.func @transform_5(%arg0: i32) -> (i32, i32) {
    %c0_i32 = arith.constant 0 : i32
    %c0_i32_0 = arith.constant 0 : i32
    return %arg0, %c0_i32 : i32, i32
  }
  func.func @transform_6(%arg0: i32) -> (i32, i32) {
    %c0_i32 = arith.constant 0 : i32
    %c0_i32_0 = arith.constant 0 : i32
    return %arg0, %c0_i32 : i32, i32
  }
}

</mosaic_0001>

<bundles_post_ra>
// kernel: tpu_custom_call.1
= control target key start
LH: loop header
LB: loop body
LE: loop exit
PB: predicated region body
PF: predicated region fallthrough
CT: control target
= control target key end

     0   :  { %vm61_vm0 = vcmask 130048   ;;  %vm176_vm1 = vcmask 64512   ;;  %vm302_vm2 = vcmask 1043456   ;;  %vm280_vm3 = vcmask 31744   ;;  %s729_s1 = inlined_call_operand.vmem [shape: f32[16,8], index: 1, kind: input, shape index: {}]   ;;  %s730_s2 = inlined_call_operand.vmem [shape: f32[16,8], index: 2, kind: input, shape index: {}]   ;;  %s731_s0 = inlined_call_operand.vmem [shape: f32[128,16], index: 0, kind: input, shape index: {}]   ;;  %s732_s3 = inlined_call_operand.vmem [shape: f32[64,8], index: 3, kind: output, shape index: {0}]   ;;  %s733_s4 = inlined_call_operand.vmem [shape: f32[32,4], index: 4, kind: output, shape index: {1}]   ;;  %s734_s5 = inlined_call_operand.vmem [shape: f32[16,2], index: 5, kind: output, shape index: {2}]   ;;  %s735_s6 = inlined_call_operand.vmem [shape: f32[8,1], index: 6, kind: output, shape index: {3}]  }
   0x1   :  { %v58_v0 = vld [vmem:[%s729_s1 + $0x8] sm:$0xff]  ;;  %v57_v2 = vld [vmem:[%s729_s1] sm:$0xff]  ;;  %v435_v7 = vld [vmem:[%s731_s0 + $0x10] ss:$2 sm:$0xff]  ;;  %vm369_vm4 = vcmask 1041408   ;;  %vm357_vm5 = vcmask 15360  }
   0x2   :  { %v60_v1 = vld [vmem:[%s730_s2 + $0x8] sm:$0xff]  ;;  %100 = vmatpush.msra.mxu0 %v58_v0  ;;  %v59_v3 = vld [vmem:[%s730_s2] sm:$0xff]  ;;  %233 = vmatpush.msra.mxu2 %v57_v2  ;;  %v443_v8 = vld [vmem:[%s731_s0 + $0x11] ss:$2 sm:$0xff]  ;;  %vm417_vm6 = vcmask 7168  }
   0x3   :  { %141 = vmatpush.msra.mxu1 %v60_v1  ;;  %v18_v4 = vld [vmem:[%s731_s0] ss:$2 sm:$0xff]  ;;  %v442_v5 = vld [vmem:[%s731_s0 + $0x1] ss:$2 sm:$0xff]  ;;  %262 = vmatpush.msra.mxu3 %v59_v3  ;;  %v50_v9 = vmax.f32 %v435_v7, %v443_v8  ;;  %v437_v13 = vld [vmem:[%s731_s0 + $0x30] ss:$2 sm:$0xff] }
   0x4   :  { %v49_v6 = vmax.f32 %v18_v4, %v442_v5  ;;  %101 = vmatpush.msra.mxu0 %v57_v2  ;;  %v436_v10 = vld [vmem:[%s731_s0 + $0x20] ss:$2 sm:$0xff]  ;;  %v444_v11 = vld [vmem:[%s731_s0 + $0x21] ss:$2 sm:$0xff]  ;;  %v445_v14 = vld [vmem:[%s731_s0 + $0x31] ss:$2 sm:$0xff] }
   0x5   :  { %142 = vmatpush.msra.mxu1 %v59_v3  ;;  %v51_v12 = vmax.f32 %v436_v10, %v444_v11  ;;  %v52_v15 = vmax.f32 %v437_v13, %v445_v14  ;;  %v438_v16 = vld [vmem:[%s731_s0 + $0x40] ss:$2 sm:$0xff]  ;;  %v446_v17 = vld [vmem:[%s731_s0 + $0x41] ss:$2 sm:$0xff]  ;;  %v439_v19 = vld [vmem:[%s731_s0 + $0x50] ss:$2 sm:$0xff] }
   0x6   :  { %450 = vmatmul.msk.f32.vlgmr.msra.gmra.mxu0 %vm61_vm0, %v49_v6  ;;  %458 = vmatmul.msk.f32.vlgmr.msra.gmra.mxu1 %vm61_vm0, %v49_v6  ;;  %v53_v18 = vmax.f32 %v438_v16, %v446_v17  ;;  %v447_v20 = vld [vmem:[%s731_s0 + $0x51] ss:$2 sm:$0xff]  ;;  %v440_v22 = vld [vmem:[%s731_s0 + $0x60] ss:$2 sm:$0xff]  ;;  %v448_v23 = vld [vmem:[%s731_s0 + $0x61] ss:$2 sm:$0xff] }
   0x7   :  { %v54_v21 = vmax.f32 %v439_v19, %v447_v20  ;;  %v55_v24 = vmax.f32 %v440_v22, %v448_v23  ;;  %v441_v25 = vld [vmem:[%s731_s0 + $0x70] ss:$2 sm:$0xff]  ;;  %v449_v26 = vld [vmem:[%s731_s0 + $0x71] ss:$2 sm:$0xff]  ;;  %v294_v0 = vld [vmem:[%s729_s1] sm:$0xf] }
   0x8   :  { %v56_v27 = vmax.f32 %v441_v25, %v449_v26  ;;  %v295_v1 = vld [vmem:[%s730_s2] sm:$0xf]  ;;  %484 = vmatpush.msk.msrb.mxu2 %vm302_vm2, %v294_v0 }
   0x9   :  { %487 = vmatpush.msk.msrb.mxu3 %vm302_vm2, %v295_v1  ;;  %v364_v20 = vld [vmem:[%s729_s1] sm:$0x3] }
   0xe   :  { %451 = vmatmul.msk.f32.gmra.mxu0 %vm61_vm0, %v50_v9  ;;  %459 = vmatmul.msk.f32.gmra.mxu1 %vm61_vm0, %v50_v9 }
  0x16   :  { %452 = vmatmul.msk.f32.gmra.mxu0 %vm61_vm0, %v51_v12  ;;  %460 = vmatmul.msk.f32.gmra.mxu1 %vm61_vm0, %v51_v12 }
  0x1e   :  { %453 = vmatmul.msk.f32.gmra.mxu0 %vm61_vm0, %v52_v15  ;;  %461 = vmatmul.msk.f32.gmra.mxu1 %vm61_vm0, %v52_v15 }
  0x26   :  { %454 = vmatmul.msk.f32.gmra.mxu0 %vm61_vm0, %v53_v18  ;;  %462 = vmatmul.msk.f32.gmra.mxu1 %vm61_vm0, %v53_v18 }
  0x2e   :  { %455 = vmatmul.msk.f32.gmra.mxu0 %vm61_vm0, %v54_v21  ;;  %463 = vmatmul.msk.f32.gmra.mxu1 %vm61_vm0, %v54_v21  ;;  %v365_v21 = vld [vmem:[%s730_s2] sm:$0x3] }
  0x36   :  { %456 = vmatmul.msk.f32.gmra.mxu0 %vm61_vm0, %v55_v24  ;;  %464 = vmatmul.msk.f32.gmra.mxu1 %vm61_vm0, %v55_v24 }
  0x3e   :  { %457 = vmatmul.msk.f32.gmra.mxu0 %vm61_vm0, %v56_v27  ;;  %465 = vmatmul.msk.f32.gmra.mxu1 %vm61_vm0, %v56_v27 }
  0x83   :  { %v103_v28 = vpop.f32.mrf.mxu0  ;;  %v144_v29 = vpop.f32.mrf.mxu1 }
  0x84   :  { %v168_v30 = vmax.f32 %v103_v28, %v144_v29 }
  0x86   :  { %177 = vst.msk [vmem:[%s732_s3] sm:$0xff] %vm176_vm1, %v168_v30 }
  0x8b   :  { %v106_v31 = vpop.f32.mrf.mxu0  ;;  %v147_v32 = vpop.f32.mrf.mxu1 }
  0x8c   :  { %v169_v33 = vmax.f32 %v106_v31, %v147_v32 }
  0x8e   :  { %178 = vst.msk [vmem:[%s732_s3 + $0x8] sm:$0xff] %vm176_vm1, %v169_v33 }
  0x93   :  { %v109_v34 = vpop.f32.mrf.mxu0  ;;  %v150_v35 = vpop.f32.mrf.mxu1 }
  0x94   :  { %v170_v36 = vmax.f32 %v109_v34, %v150_v35 }
  0x95   :  { %v185_v37 = vld [vmem:[%s732_s3] ss:$2 sm:$0xff]  ;;  %v469_v38 = vld [vmem:[%s732_s3 + $0x1] ss:$2 sm:$0xff] }
  0x96   :  { %179 = vst.msk [vmem:[%s732_s3 + $0x10] sm:$0xff] %vm176_vm1, %v170_v36  ;;  %v200_v39 = vmax.f32 %v185_v37, %v469_v38 }
  0x98   :  { %473 = vmatmul.msk.f32.vlgmr.msra.gmra.mxu2 %vm176_vm1, %v200_v39  ;;  %477 = vmatmul.msk.f32.vlgmr.msra.gmra.mxu3 %vm176_vm1, %v200_v39 }
  0x99   :  { %491 = vmatpush.msk.msra.mxu2 %vm369_vm4, %v364_v20  ;;  %493 = vmatpush.msk.msra.mxu3 %vm369_vm4, %v365_v21 }
  0x9b   :  { %v112_v40 = vpop.f32.mrf.mxu0  ;;  %v153_v41 = vpop.f32.mrf.mxu1 }
  0x9c   :  { %v171_v42 = vmax.f32 %v112_v40, %v153_v41 }
  0x9e   :  { %180 = vst.msk [vmem:[%s732_s3 + $0x18] sm:$0xff] %vm176_vm1, %v171_v42 }
  0xa3   :  { %v115_v43 = vpop.f32.mrf.mxu0  ;;  %v156_v44 = vpop.f32.mrf.mxu1 }
  0xa4   :  { %v172_v45 = vmax.f32 %v115_v43, %v156_v44 }
  0xa5   :  { %v466_v46 = vld [vmem:[%s732_s3 + $0x10] ss:$2 sm:$0xff]  ;;  %v470_v47 = vld [vmem:[%s732_s3 + $0x11] ss:$2 sm:$0xff] }
  0xa6   :  { %181 = vst.msk [vmem:[%s732_s3 + $0x20] sm:$0xff] %vm176_vm1, %v172_v45  ;;  %v201_v48 = vmax.f32 %v466_v46, %v470_v47 }
  0xa8   :  { %474 = vmatmul.msk.f32.gmra.mxu2 %vm176_vm1, %v201_v48  ;;  %478 = vmatmul.msk.f32.gmra.mxu3 %vm176_vm1, %v201_v48 }
  0xab   :  { %v118_v49 = vpop.f32.mrf.mxu0  ;;  %v159_v50 = vpop.f32.mrf.mxu1 }
  0xac   :  { %v173_v51 = vmax.f32 %v118_v49, %v159_v50 }
  0xae   :  { %182 = vst.msk [vmem:[%s732_s3 + $0x28] sm:$0xff] %vm176_vm1, %v173_v51 }
  0xb3   :  { %v121_v52 = vpop.f32.mrf.mxu0  ;;  %v162_v53 = vpop.f32.mrf.mxu1 }
  0xb4   :  { %v174_v54 = vmax.f32 %v121_v52, %v162_v53 }
  0xb5   :  { %v467_v55 = vld [vmem:[%s732_s3 + $0x20] ss:$2 sm:$0xff]  ;;  %v471_v56 = vld [vmem:[%s732_s3 + $0x21] ss:$2 sm:$0xff] }
  0xb6   :  { %183 = vst.msk [vmem:[%s732_s3 + $0x30] sm:$0xff] %vm176_vm1, %v174_v54  ;;  %v202_v57 = vmax.f32 %v467_v55, %v471_v56 }
  0xb8   :  { %475 = vmatmul.msk.f32.gmra.mxu2 %vm176_vm1, %v202_v57  ;;  %479 = vmatmul.msk.f32.gmra.mxu3 %vm176_vm1, %v202_v57 }
  0xbb   :  { %v124_v58 = vpop.f32.mrf.mxu0  ;;  %v165_v59 = vpop.f32.mrf.mxu1 }
  0xbc   :  { %v175_v60 = vmax.f32 %v124_v58, %v165_v59 }
  0xbe   :  { %184 = vst.msk [vmem:[%s732_s3 + $0x38] sm:$0xff] %vm176_vm1, %v175_v60 }
  0xc5   :  { %v468_v61 = vld [vmem:[%s732_s3 + $0x30] ss:$2 sm:$0xff]  ;;  %v472_v62 = vld [vmem:[%s732_s3 + $0x31] ss:$2 sm:$0xff] }
  0xc6   :  { %v203_v63 = vmax.f32 %v468_v61, %v472_v62 }
  0xc8   :  { %476 = vmatmul.msk.f32.gmra.mxu2 %vm176_vm1, %v203_v63  ;;  %480 = vmatmul.msk.f32.gmra.mxu3 %vm176_vm1, %v203_v63 }
 0x11b   :  { %v235_v2 = vpop.f32.mrf.mxu2  ;;  %v264_v3 = vpop.f32.mrf.mxu3 }
 0x11c   :  { %v276_v4 = vmax.f32 %v235_v2, %v264_v3 }
 0x11e   :  { %281 = vst.msk [vmem:[%s733_s4] sm:$0xff] %vm280_vm3, %v276_v4 }
 0x12b   :  { %v238_v5 = vpop.f32.mrf.mxu2  ;;  %v267_v6 = vpop.f32.mrf.mxu3 }
 0x12c   :  { %v277_v7 = vmax.f32 %v238_v5, %v267_v6 }
 0x12e   :  { %282 = vst.msk [vmem:[%s733_s4 + $0x8] sm:$0xff] %vm280_vm3, %v277_v7 }
 0x135   :  { %v285_v8 = vld [vmem:[%s733_s4] ss:$2 sm:$0xff]  ;;  %v482_v9 = vld [vmem:[%s733_s4 + $0x1] ss:$2 sm:$0xff] }
 0x136   :  { %v292_v10 = vmax.f32 %v285_v8, %v482_v9 }
 0x138   :  { %485 = vmatmul.msk.f32.vlgmr.msrb.gmra.mxu2 %vm280_vm3, %v292_v10  ;;  %488 = vmatmul.msk.f32.vlgmr.msrb.gmra.mxu3 %vm280_vm3, %v292_v10 }
 0x13b   :  { %v241_v11 = vpop.f32.mrf.mxu2  ;;  %v270_v12 = vpop.f32.mrf.mxu3 }
 0x13c   :  { %v278_v13 = vmax.f32 %v241_v11, %v270_v12 }
 0x13e   :  { %283 = vst.msk [vmem:[%s733_s4 + $0x10] sm:$0xff] %vm280_vm3, %v278_v13 }
 0x14b   :  { %v244_v14 = vpop.f32.mrf.mxu2  ;;  %v273_v15 = vpop.f32.mrf.mxu3 }
 0x14c   :  { %v279_v16 = vmax.f32 %v244_v14, %v273_v15 }
 0x14e   :  { %284 = vst.msk [vmem:[%s733_s4 + $0x18] sm:$0xff] %vm280_vm3, %v279_v16 }
 0x155   :  { %v481_v17 = vld [vmem:[%s733_s4 + $0x10] ss:$2 sm:$0xff]  ;;  %v483_v18 = vld [vmem:[%s733_s4 + $0x11] ss:$2 sm:$0xff] }
 0x156   :  { %v293_v19 = vmax.f32 %v481_v17, %v483_v18 }
 0x158   :  { %486 = vmatmul.msk.f32.gmra.mxu2 %vm280_vm3, %v293_v19  ;;  %489 = vmatmul.msk.f32.gmra.mxu3 %vm280_vm3, %v293_v19 }
 0x1bb   :  { %v323_v22 = vpop.f32.mrf.mxu2  ;;  %v349_v23 = vpop.f32.mrf.mxu3 }
 0x1bc   :  { %v355_v24 = vmax.f32 %v323_v22, %v349_v23 }
 0x1be   :  { %358 = vst.msk [vmem:[%s734_s5] sm:$0xff] %vm357_vm5, %v355_v24 }
 0x1db   :  { %v326_v25 = vpop.f32.mrf.mxu2  ;;  %v352_v26 = vpop.f32.mrf.mxu3 }
 0x1dc   :  { %v356_v27 = vmax.f32 %v326_v25, %v352_v26 }
 0x1de   :  { %359 = vst.msk [vmem:[%s734_s5 + $0x8] sm:$0xff] %vm357_vm5, %v356_v27 }
 0x1e5   :  { %v360_v28 = vld [vmem:[%s734_s5] ss:$2 sm:$0xff]  ;;  %v490_v29 = vld [vmem:[%s734_s5 + $0x1] ss:$2 sm:$0xff] }
 0x1e6   :  { %v363_v30 = vmax.f32 %v360_v28, %v490_v29 }
 0x1e8   :  { %492 = vmatmul.msk.f32.vlgmr.msra.gmra.mxu2 %vm357_vm5, %v363_v30  ;;  %494 = vmatmul.msk.f32.vlgmr.msra.gmra.mxu3 %vm357_vm5, %v363_v30 }
 0x26b   :  { %v390_v31 = vpop.f32.mrf.mxu2  ;;  %v413_v32 = vpop.f32.mrf.mxu3 }
 0x26c   :  { %v416_v33 = vmax.f32 %v390_v31, %v413_v32 }
 0x26e   :  { %418 = vst.msk [vmem:[%s735_s6] sm:$0xff] %vm417_vm6, %v416_v33 }

</bundles_post_ra>
